<compile_context>
chip_gen: v7x
topology: tpu7x:2x2x1
jax: 0.10.0
libtpu: 0.0.40
codegen_flags: <defaults>
</compile_context>

<pallas_src>
import functools

import jax
import jax.numpy as jnp
from jax.experimental import pallas as pl
from jax.experimental.pallas import tpu as pltpu

N_STEPS = 16
DECAY = 0.8
LANE = 128           # TPU vreg lane width
MAX_TILE_ROWS = 512  # rows of 128 lanes per spatial tile (see VMEM note above)


def _membrane_kernel(x_ref, o_ref, *, coef):
    """Weighted sum over the (fully unrolled) time axis of one spatial tile.

    x_ref: (T, tile_r, 128) f32 VMEM tile
    o_ref: (tile_r, 128)    f32 VMEM tile
    coef : tuple of T Python floats (compile-time constants)
    """
    x = x_ref[...]                       # one load of the whole block
    acc = x[0] * coef[0]
    for t in range(1, len(coef)):        # static unroll: pure VPU MACs in vregs
        acc = acc + x[t] * coef[t]
    o_ref[...] = acc                     # single lane-dense store per tile


def membrane_output_layer(x: jax.Array) -> jax.Array:
    """x: (T, *spatial) float32 -> (*spatial) float32 weighted temporal sum."""
    T = x.shape[0]
    assert T == N_STEPS, f"expected T={N_STEPS}, got {T}"
    spatial_shape = x.shape[1:]
    S = 1
    for d in spatial_shape:
        S *= d

    # Deterministic "parameter" (registered buffer in the PyTorch module),
    # folded into the kernel as trace-time scalar constants.
    coef = tuple(float(DECAY) ** (T - 1 - t) for t in range(T))

    # Lane-dense flatten: (T, S) -> zero-pad S to r_pad*128 -> (T, r_pad, 128).
    R = pl.cdiv(S, LANE)
    if R <= MAX_TILE_ROWS:
        tile_r = R                        # full extent -> (8,128) rule satisfied
        r_pad = R
    else:
        tile_r = MAX_TILE_ROWS            # multiple of 8
        r_pad = pl.cdiv(R, tile_r) * tile_r
    s_pad = r_pad * LANE

    x_flat = x.reshape(T, S).astype(jnp.float32)
    if s_pad != S:
        # Zero padding: padded lanes contribute zeros and are sliced off below,
        # so no garbage aliases real output elements.
        x_flat = jnp.pad(x_flat, ((0, 0), (0, s_pad - S)))
    x3 = x_flat.reshape(T, r_pad, LANE)

    num_tiles = r_pad // tile_r

    out = pl.pallas_call(
        functools.partial(_membrane_kernel, coef=coef),
        out_shape=jax.ShapeDtypeStruct((r_pad, LANE), jnp.float32),
        grid_spec=pl.GridSpec(
            grid=(num_tiles,),
            in_specs=[pl.BlockSpec((T, tile_r, LANE), lambda i: (0, i, 0))],
            out_specs=pl.BlockSpec((tile_r, LANE), lambda i: (i, 0)),
        ),
        compiler_params=pltpu.CompilerParams(
            # Independent spatial tiles -> shardable across TCs on v7x.
            dimension_semantics=("parallel",),
        ),
    )(x3)

    return out.reshape(s_pad)[:S].reshape(spatial_shape)


if __name__ == "__main__":
    key = jax.random.PRNGKey(0)
    T, N, C, L = N_STEPS, 2, 4, 16                 # small 1-D SNN shapes
    x = jax.random.normal(key, (T, N, C, L), dtype=jnp.float32)

    out = jax.block_until_ready(membrane_output_layer(x))

    # Pure-JAX reference for sanity.
    coef_ref = (DECAY ** jnp.arange(T - 1, -1, -1, dtype=jnp.float32))[:, None, None, None]
    ref = jnp.sum(x * coef_ref, axis=0)

    assert out.shape == (N, C, L)
    assert jnp.allclose(out, ref, atol=1e-5, rtol=1e-5)
    print("KERNEL_OK")
</pallas_src>

<mosaic_0001>
module attributes {stable_mosaic.version = 11 : i64} {
  func.func @_membrane_kernel(%arg0: i32, %arg1: memref<16x1x128xf32, #tpu.memory_space<vmem>>, %arg2: memref<1x128xf32, #tpu.memory_space<vmem>>) attributes {dimension_semantics = [#tpu.dimension_semantics<parallel>], iteration_bounds = array<i64: 1>, scalar_prefetch = 0 : i64, scratch_operands = 0 : i64, tpu.core_type = #tpu.core_type<tc>, window_params = [{transform_indices = @transform_0, window_bounds = array<i64: 16, 1, 128>}, {transform_indices = @transform_1, window_bounds = array<i64: 1, 128>}]} {
    %c0 = arith.constant 0 : index
    %c0_0 = arith.constant 0 : index
    %c0_1 = arith.constant 0 : index
    %0 = vector.load %arg1[%c0, %c0_0, %c0_1] : memref<16x1x128xf32, #tpu.memory_space<vmem>>, vector<16x1x128xf32>
    %1 = vector.extract_strided_slice %0 {offsets = [0, 0, 0], sizes = [1, 1, 128], strides = [1, 1, 1]} : vector<16x1x128xf32> to vector<1x1x128xf32>
    %2 = vector.shape_cast %1 : vector<1x1x128xf32> to vector<1x128xf32>
    %cst = arith.constant 0.0351843722 : f32
    %3 = vector.broadcast %cst : f32 to vector<1x128xf32>
    %4 = arith.mulf %2, %3 : vector<1x128xf32>
    %5 = vector.extract_strided_slice %0 {offsets = [1, 0, 0], sizes = [1, 1, 128], strides = [1, 1, 1]} : vector<16x1x128xf32> to vector<1x1x128xf32>
    %6 = vector.shape_cast %5 : vector<1x1x128xf32> to vector<1x128xf32>
    %cst_2 = arith.constant 0.0439804643 : f32
    %7 = vector.broadcast %cst_2 : f32 to vector<1x128xf32>
    %8 = arith.mulf %6, %7 : vector<1x128xf32>
    %9 = arith.addf %4, %8 : vector<1x128xf32>
    %10 = vector.extract_strided_slice %0 {offsets = [2, 0, 0], sizes = [1, 1, 128], strides = [1, 1, 1]} : vector<16x1x128xf32> to vector<1x1x128xf32>
    %11 = vector.shape_cast %10 : vector<1x1x128xf32> to vector<1x128xf32>
    %cst_3 = arith.constant 0.0549755804 : f32
    %12 = vector.broadcast %cst_3 : f32 to vector<1x128xf32>
    %13 = arith.mulf %11, %12 : vector<1x128xf32>
    %14 = arith.addf %9, %13 : vector<1x128xf32>
    %15 = vector.extract_strided_slice %0 {offsets = [3, 0, 0], sizes = [1, 1, 128], strides = [1, 1, 1]} : vector<16x1x128xf32> to vector<1x1x128xf32>
    %16 = vector.shape_cast %15 : vector<1x1x128xf32> to vector<1x128xf32>
    %cst_4 = arith.constant 0.0687194764 : f32
    %17 = vector.broadcast %cst_4 : f32 to vector<1x128xf32>
    %18 = arith.mulf %16, %17 : vector<1x128xf32>
    %19 = arith.addf %14, %18 : vector<1x128xf32>
    %20 = vector.extract_strided_slice %0 {offsets = [4, 0, 0], sizes = [1, 1, 128], strides = [1, 1, 1]} : vector<16x1x128xf32> to vector<1x1x128xf32>
    %21 = vector.shape_cast %20 : vector<1x1x128xf32> to vector<1x128xf32>
    %cst_5 = arith.constant 0.0858993455 : f32
    %22 = vector.broadcast %cst_5 : f32 to vector<1x128xf32>
    %23 = arith.mulf %21, %22 : vector<1x128xf32>
    %24 = arith.addf %19, %23 : vector<1x128xf32>
    %25 = vector.extract_strided_slice %0 {offsets = [5, 0, 0], sizes = [1, 1, 128], strides = [1, 1, 1]} : vector<16x1x128xf32> to vector<1x1x128xf32>
    %26 = vector.shape_cast %25 : vector<1x1x128xf32> to vector<1x128xf32>
    %cst_6 = arith.constant 0.107374184 : f32
    %27 = vector.broadcast %cst_6 : f32 to vector<1x128xf32>
    %28 = arith.mulf %26, %27 : vector<1x128xf32>
    %29 = arith.addf %24, %28 : vector<1x128xf32>
    %30 = vector.extract_strided_slice %0 {offsets = [6, 0, 0], sizes = [1, 1, 128], strides = [1, 1, 1]} : vector<16x1x128xf32> to vector<1x1x128xf32>
    %31 = vector.shape_cast %30 : vector<1x1x128xf32> to vector<1x128xf32>
    %cst_7 = arith.constant 0.134217724 : f32
    %32 = vector.broadcast %cst_7 : f32 to vector<1x128xf32>
    %33 = arith.mulf %31, %32 : vector<1x128xf32>
    %34 = arith.addf %29, %33 : vector<1x128xf32>
    %35 = vector.extract_strided_slice %0 {offsets = [7, 0, 0], sizes = [1, 1, 128], strides = [1, 1, 1]} : vector<16x1x128xf32> to vector<1x1x128xf32>
    %36 = vector.shape_cast %35 : vector<1x1x128xf32> to vector<1x128xf32>
    %cst_8 = arith.constant 0.167772159 : f32
    %37 = vector.broadcast %cst_8 : f32 to vector<1x128xf32>
    %38 = arith.mulf %36, %37 : vector<1x128xf32>
    %39 = arith.addf %34, %38 : vector<1x128xf32>
    %40 = vector.extract_strided_slice %0 {offsets = [8, 0, 0], sizes = [1, 1, 128], strides = [1, 1, 1]} : vector<16x1x128xf32> to vector<1x1x128xf32>
    %41 = vector.shape_cast %40 : vector<1x1x128xf32> to vector<1x128xf32>
    %cst_9 = arith.constant 0.209715202 : f32
    %42 = vector.broadcast %cst_9 : f32 to vector<1x128xf32>
    %43 = arith.mulf %41, %42 : vector<1x128xf32>
    %44 = arith.addf %39, %43 : vector<1x128xf32>
    %45 = vector.extract_strided_slice %0 {offsets = [9, 0, 0], sizes = [1, 1, 128], strides = [1, 1, 1]} : vector<16x1x128xf32> to vector<1x1x128xf32>
    %46 = vector.shape_cast %45 : vector<1x1x128xf32> to vector<1x128xf32>
    %cst_10 = arith.constant 2.621440e-01 : f32
    %47 = vector.broadcast %cst_10 : f32 to vector<1x128xf32>
    %48 = arith.mulf %46, %47 : vector<1x128xf32>
    %49 = arith.addf %44, %48 : vector<1x128xf32>
    %50 = vector.extract_strided_slice %0 {offsets = [10, 0, 0], sizes = [1, 1, 128], strides = [1, 1, 1]} : vector<16x1x128xf32> to vector<1x1x128xf32>
    %51 = vector.shape_cast %50 : vector<1x1x128xf32> to vector<1x128xf32>
    %cst_11 = arith.constant 3.276800e-01 : f32
    %52 = vector.broadcast %cst_11 : f32 to vector<1x128xf32>
    %53 = arith.mulf %51, %52 : vector<1x128xf32>
    %54 = arith.addf %49, %53 : vector<1x128xf32>
    %55 = vector.extract_strided_slice %0 {offsets = [11, 0, 0], sizes = [1, 1, 128], strides = [1, 1, 1]} : vector<16x1x128xf32> to vector<1x1x128xf32>
    %56 = vector.shape_cast %55 : vector<1x1x128xf32> to vector<1x128xf32>
    %cst_12 = arith.constant 4.096000e-01 : f32
    %57 = vector.broadcast %cst_12 : f32 to vector<1x128xf32>
    %58 = arith.mulf %56, %57 : vector<1x128xf32>
    %59 = arith.addf %54, %58 : vector<1x128xf32>
    %60 = vector.extract_strided_slice %0 {offsets = [12, 0, 0], sizes = [1, 1, 128], strides = [1, 1, 1]} : vector<16x1x128xf32> to vector<1x1x128xf32>
    %61 = vector.shape_cast %60 : vector<1x1x128xf32> to vector<1x128xf32>
    %cst_13 = arith.constant 5.120000e-01 : f32
    %62 = vector.broadcast %cst_13 : f32 to vector<1x128xf32>
    %63 = arith.mulf %61, %62 : vector<1x128xf32>
    %64 = arith.addf %59, %63 : vector<1x128xf32>
    %65 = vector.extract_strided_slice %0 {offsets = [13, 0, 0], sizes = [1, 1, 128], strides = [1, 1, 1]} : vector<16x1x128xf32> to vector<1x1x128xf32>
    %66 = vector.shape_cast %65 : vector<1x1x128xf32> to vector<1x128xf32>
    %cst_14 = arith.constant 6.400000e-01 : f32
    %67 = vector.broadcast %cst_14 : f32 to vector<1x128xf32>
    %68 = arith.mulf %66, %67 : vector<1x128xf32>
    %69 = arith.addf %64, %68 : vector<1x128xf32>
    %70 = vector.extract_strided_slice %0 {offsets = [14, 0, 0], sizes = [1, 1, 128], strides = [1, 1, 1]} : vector<16x1x128xf32> to vector<1x1x128xf32>
    %71 = vector.shape_cast %70 : vector<1x1x128xf32> to vector<1x128xf32>
    %cst_15 = arith.constant 8.000000e-01 : f32
    %72 = vector.broadcast %cst_15 : f32 to vector<1x128xf32>
    %73 = arith.mulf %71, %72 : vector<1x128xf32>
    %74 = arith.addf %69, %73 : vector<1x128xf32>
    %75 = vector.extract_strided_slice %0 {offsets = [15, 0, 0], sizes = [1, 1, 128], strides = [1, 1, 1]} : vector<16x1x128xf32> to vector<1x1x128xf32>
    %76 = vector.shape_cast %75 : vector<1x1x128xf32> to vector<1x128xf32>
    %cst_16 = arith.constant 1.000000e+00 : f32
    %77 = vector.broadcast %cst_16 : f32 to vector<1x128xf32>
    %78 = arith.mulf %76, %77 : vector<1x128xf32>
    %79 = arith.addf %74, %78 : vector<1x128xf32>
    %c0_17 = arith.constant 0 : index
    %c0_18 = arith.constant 0 : index
    %80 = vector.load %arg2[%c0_17, %c0_18] : memref<1x128xf32, #tpu.memory_space<vmem>>, vector<1x128xf32>
    tpu.vector_store %arg2[%c0_17, %c0_18], %79 {strides = array<i32>} : memref<1x128xf32, #tpu.memory_space<vmem>>, vector<1x128xf32>,
    return
  }
  func.func @transform_0(%arg0: i32) -> (i32, i32, i32) {
    %c0_i32 = arith.constant 0 : i32
    %c0_i32_0 = arith.constant 0 : i32
    %c0_i32_1 = arith.constant 0 : i32
    return %c0_i32, %arg0, %c0_i32_0 : i32, i32, i32
  }
  func.func @transform_1(%arg0: i32) -> (i32, i32) {
    %c0_i32 = arith.constant 0 : i32
    %c0_i32_0 = arith.constant 0 : i32
    return %arg0, %c0_i32 : i32, i32
  }
}

</mosaic_0001>

<bundles_post_ra>
// kernel: tpu_custom_call.1
= control target key start
LH: loop header
LB: loop body
LE: loop exit
PB: predicated region body
PF: predicated region fallthrough
CT: control target
= control target key end

     0   :  { %6 = vsyncpa [#allocation3], 0  ;;  %s175_s0 = inlined_call_operand.hbm [shape: f32[16,1,128], index: 0, kind: input, shape index: {}]   ;;  %s176_s1 = inlined_call_operand.hbm [shape: f32[1,128], index: 1, kind: output, shape index: {}]  }
   0x1   :  { %7 = vsyncpa [#allocation4], 0  ;;  %s137_s6 = smov [#allocation2]   ;;  %s89_s10 = scalar_lea.hbm %s175_s0, 256 }
   0x2   :  { %s13_s7 = sshll.u32 %s137_s6, 4  ;;  %p90_p0 = scmp.ne.s32.totalorder %s175_s0, %s89_s10  ;;  %s14_s7 = int_to_ptr.vmem [resolvable:$true] %s13_s7 }
   0x3   :  { %p93_p1 = scmp.lt.u32.totalorder %s89_s10, %s175_s0 }
   0x5   :  { %p95_p2 = pnand %p93_p1, %p90_p0 }
   0x7   :  { %98 = shalt.err (!%p95_p2)
}
   0x8   :  { %s99_s15 = scalar_lea.vmem %s14_s7, 256  ;;  %p104_p4 = scmp.lt.s32.totalorder %s14_s7, %s14_s7 }
   0x9   :  { %p100_p3 = scmp.ne.s32.totalorder %s14_s7, %s99_s15  ;;  %p105_p5 = scmp.lt.s32.totalorder %s99_s15, %s99_s15 }
   0xb   :  { %p106_p6 = por %p105_p5, %p104_p4 }
   0xd   :  { %p107_p7 = pnand %p106_p6, %p100_p3 }
   0xf   :  { %110 = shalt.err (!%p107_p7)
}
  0x10   :  { %s138_s16 = smov 16   ;;  %s139_s17 = smov 1  }
  0x11   :  { %19 = dma.hbm_to_vmem [thread:$0]  %s175_s0, 256, %s14_s7, [#allocation3], %s138_s16, %s138_s16, %s139_s17  }
  0x12   :  { %133 = dma.done.wait [#allocation3], 256  }
  0x13   :  { %134 = vsyncadd [#allocation3], 4294967040  ;;  %v23_v0 = vld [vmem:[#allocation2] sm:$0x1]  ;;  %v24_v1 = vld [vmem:[#allocation2 + $0x1] sm:$0x1] }
  0x14   :  { %v25_v2 = vld [vmem:[#allocation2 + $0x2] sm:$0x1]  ;;  %v26_v3 = vld [vmem:[#allocation2 + $0x3] sm:$0x1]  ;;  %v39_v4 = vmul.f32 0.035184372, %v23_v0 }
  0x15   :  { %v40_v5 = vmul.f32 0.043980464, %v24_v1  ;;  %v27_v6 = vld [vmem:[#allocation2 + $0x4] sm:$0x1]  ;;  %v42_v7 = vmul.f32 0.05497558, %v25_v2 }
  0x16   :  { %v44_v9 = vmul.f32 0.06871948, %v26_v3  ;;  %v28_v10 = vld [vmem:[#allocation2 + $0x5] sm:$0x1]  ;;  %v46_v12 = vmul.f32 0.085899346, %v27_v6 }
  0x17   :  { %v41_v8 = vadd.f32 %v40_v5, %v39_v4  ;;  %v29_v13 = vld [vmem:[#allocation2 + $0x6] sm:$0x1]  ;;  %v48_v15 = vmul.f32 0.107374184, %v28_v10  ;;  %v30_v16 = vld [vmem:[#allocation2 + $0x7] sm:$0x1] }
  0x18   :  { %v50_v18 = vmul.f32 0.13421772, %v29_v13  ;;  %v31_v19 = vld [vmem:[#allocation2 + $0x8] sm:$0x1]  ;;  %v52_v21 = vmul.f32 0.16777216, %v30_v16 }
  0x19   :  { %v43_v11 = vadd.f32 %v42_v7, %v41_v8  ;;  %v32_v22 = vld [vmem:[#allocation2 + $0x9] sm:$0x1]  ;;  %v54_v24 = vmul.f32 0.2097152, %v31_v19  ;;  %v33_v25 = vld [vmem:[#allocation2 + $0xa] sm:$0x1] }
  0x1a   :  { %v56_v27 = vmul.f32 0.262144, %v32_v22  ;;  %v34_v28 = vld [vmem:[#allocation2 + $0xb] sm:$0x1]  ;;  %v58_v30 = vmul.f32 0.32768, %v33_v25 }
  0x1b   :  { %v45_v14 = vadd.f32 %v44_v9, %v43_v11  ;;  %v35_v31 = vld [vmem:[#allocation2 + $0xc] sm:$0x1]  ;;  %v60_v33 = vmul.f32 0.4096, %v34_v28  ;;  %v36_v34 = vld [vmem:[#allocation2 + $0xd] sm:$0x1] }
  0x1c   :  { %v62_v36 = vmul.f32 0.512, %v35_v31  ;;  %v37_v37 = vld [vmem:[#allocation2 + $0xe] sm:$0x1]  ;;  %v64_v39 = vmul.f32 0.64, %v36_v34 }
  0x1d   :  { %v47_v17 = vadd.f32 %v46_v12, %v45_v14  ;;  %v66_v41 = vmul.f32 0.8, %v37_v37  ;;  %v38_v43 = vld [vmem:[#allocation2 + $0xf] sm:$0x1]  ;;  %s140_s0 = smov [#allocation5]  }
  0x1e   :  { %s76_s20 = sshll.u32 %s140_s0, 4  ;;  %s77_s20 = int_to_ptr.vmem [resolvable:$true] %s76_s20 }
  0x1f   :  { %v49_v20 = vadd.f32 %v48_v15, %v47_v17  ;;  %s111_s21 = scalar_lea.vmem %s77_s20, 16  ;;  %s115_s22 = scalar_lea.vmem %s77_s20, 32 }
  0x20   :  { %p112_p8 = scmp.ne.s32.totalorder %s77_s20, %s111_s21  ;;  %p116_p9 = scmp.lt.s32.totalorder %s77_s20, %s77_s20 }
  0x21   :  { %v51_v23 = vadd.f32 %v50_v18, %v49_v20  ;;  %p117_p10 = scmp.lt.s32.totalorder %s115_s22, %s111_s21 }
  0x23   :  { %v53_v26 = vadd.f32 %v52_v21, %v51_v23  ;;  %p118_p11 = por %p117_p10, %p116_p9 }
  0x25   :  { %v55_v29 = vadd.f32 %v54_v24, %v53_v26  ;;  %p119_p12 = pnand %p118_p11, %p112_p8 }
  0x27   :  { %v57_v32 = vadd.f32 %v56_v27, %v55_v29 }
  0x29   :  { %v59_v35 = vadd.f32 %v58_v30, %v57_v32 }
  0x2b   :  { %v61_v38 = vadd.f32 %v60_v33, %v59_v35 }
  0x2d   :  { %v63_v40 = vadd.f32 %v62_v36, %v61_v38 }
  0x2f   :  { %v65_v42 = vadd.f32 %v64_v39, %v63_v40 }
  0x31   :  { %v67_v44 = vadd.f32 %v66_v41, %v65_v42 }
  0x33   :  { %v68_v45 = vadd.f32 %v67_v44, %v38_v43 }
  0x35   :  { %69 = vst [vmem:[#allocation5] sm:$0x1] %v68_v45 }
  0x36   :  { %122 = shalt.err (!%p119_p12)
}
  0x37   :  { %s123_s25 = scalar_lea.hbm %s176_s1, 16 }
  0x38   :  { %p124_p13 = scmp.ne.s32.totalorder %s176_s1, %s123_s25  ;;  %p127_p0 = scmp.lt.u32.totalorder %s123_s25, %s176_s1 }
  0x3a   :  { %p129_p1 = pnand %p127_p0, %p124_p13 }
  0x3c   :  { %132 = shalt.err (!%p129_p1)
}
  0x3d   :  { %79 = dma.vmem_to_hbm [thread:$0]  %s77_s20, 16, %s176_s1, [#allocation4]  }
  0x3e   :  { %135 = dma.done.wait [#allocation4], 16  }
  0x3f   :  { %136 = vsyncadd [#allocation4], 4294967280 }
  0x40   :  { %83 = vsyncpa [#allocation3], 1 }
  0x41   :  { %84 = vsyncpa [#allocation4], 1 }

</bundles_post_ra>
